<compile_context>
chip_gen: v7x
topology: tpu7x:2x2x1
jax: 0.10.0
libtpu: 0.0.40
codegen_flags: <defaults>
</compile_context>

<pallas_src>
import functools

import jax
import jax.numpy as jnp
from jax import lax
from jax.experimental import pallas as pl
from jax.experimental.pallas import tpu as pltpu


def _dilated_residual_kernel(x_ref, wd_ref, bd_ref, w1_ref, b1_ref, m_ref, o_ref,
                             *, dilation: int):
    # x_ref : (C, T)  f32   one batch element, channels-first (T on lanes)
    # wd_ref: (C, 3C) bf16  fused dilated-conv weight, columns = [tap0 | tap1 | tap2]
    # bd_ref: (C, 1)  f32   dilated-conv bias (column vector, broadcasts over T)
    # w1_ref: (C, C)  bf16  1x1 conv weight (C_out, C_in)
    # b1_ref: (C, 1)  f32   1x1 conv bias
    # m_ref : (1, T)  f32   mask[:, 0:1, :] (lane-dense)
    # o_ref : (C, T)
    x = x_ref[...]                                   # f32, kept for the residual
    C, T = x.shape
    d = dilation

    # Time index along the lane dim, used to zero the out-of-range halo taps.
    t_idx = lax.broadcasted_iota(jnp.int32, (C, T), 1)

    if d < T:
        # tap 0 needs x[:, t - d] (zero for t < d); tap 2 needs x[:, t + d]
        # (zero for t >= T - d). Lane rotations run on the XLU slot.
        x_left = jnp.where(t_idx >= d,
                           pltpu.roll(x, shift=d, axis=1), 0.0)
        x_right = jnp.where(t_idx < T - d,
                            pltpu.roll(x, shift=T - d, axis=1), 0.0)
    else:
        # Dilation >= T: both halo taps fall entirely outside the sequence.
        x_left = jnp.zeros_like(x)
        x_right = jnp.zeros_like(x)

    # Fused K = 3*C_in contraction: (C_out, 3C) @ (3C, T) on the MXU in bf16.
    x3 = jnp.concatenate([x_left, x, x_right], axis=0).astype(jnp.bfloat16)
    acc = jnp.dot(wd_ref[...], x3, preferred_element_type=jnp.float32)
    acc = acc + bd_ref[...]                          # (C, 1) broadcast over T
    h = jnp.maximum(acc, 0.0)                        # ReLU in f32

    # 1x1 conv == plain channel matmul: (C_out, C_in) @ (C_in, T).
    out = jnp.dot(w1_ref[...], h.astype(jnp.bfloat16),
                  preferred_element_type=jnp.float32) + b1_ref[...]

    # TODO(synk): nn.Dropout() is identity at inference; training-mode dropout
    # (random masking) is intentionally not implemented here.

    o_ref[...] = ((x + out) * m_ref[...]).astype(o_ref.dtype)


def dilated_residual_layer(x_nct, mask_nct, wd_torch, bd, w1_torch, b1,
                           *, dilation: int):
    """x_nct: (N, C, T) f32; mask_nct: (N, M, T); weights in PyTorch Conv1d layout.

    wd_torch: (C_out, C_in, 3), bd: (C_out,), w1_torch: (C_out, C_in, 1), b1: (C_out,).
    Returns (N, C, T).
    """
    N, C, T = x_nct.shape
    assert wd_torch.shape == (C, C, 3), "residual path requires C_in == C_out"
    assert mask_nct.shape[0] == N and mask_nct.shape[2] == T

    # Fused tap-major dilated weight: (C_out, 3*C_in), column k*C + ci <- w[co, ci, k].
    wd_fused = jnp.transpose(wd_torch, (0, 2, 1)).reshape(C, 3 * C).astype(jnp.bfloat16)
    w1_mat = w1_torch.reshape(C, C).astype(jnp.bfloat16)          # (C_out, C_in)
    bd_col = bd.reshape(C, 1).astype(jnp.float32)
    b1_col = b1.reshape(C, 1).astype(jnp.float32)
    mask_1t = mask_nct[:, 0:1, :].astype(jnp.float32)             # (N, 1, T) lane-dense

    kernel = functools.partial(_dilated_residual_kernel, dilation=dilation)

    out_nct = pl.pallas_call(
        kernel,
        out_shape=jax.ShapeDtypeStruct((N, C, T), x_nct.dtype),
        grid_spec=pltpu.PrefetchScalarGridSpec(
            num_scalar_prefetch=0,
            grid=(N,),
            in_specs=[
                pl.BlockSpec((None, C, T), lambda n: (n, 0, 0)),    # x (C, T)
                pl.BlockSpec((C, 3 * C), lambda n: (0, 0)),         # fused dilated W
                pl.BlockSpec((C, 1), lambda n: (0, 0)),             # dilated bias
                pl.BlockSpec((C, C), lambda n: (0, 0)),             # 1x1 weight
                pl.BlockSpec((C, 1), lambda n: (0, 0)),             # 1x1 bias
                pl.BlockSpec((None, 1, T), lambda n: (n, 0, 0)),    # mask (1, T)
            ],
            out_specs=pl.BlockSpec((None, C, T), lambda n: (n, 0, 0)),
        ),
        compiler_params=pltpu.CompilerParams(
            dimension_semantics=("parallel",)),
    )(x_nct, wd_fused, bd_col, w1_mat, b1_col, mask_1t)

    return out_nct


def _reference(x_nct, mask_nct, wd_torch, bd, w1_torch, b1, *, dilation: int):
    """Pure-JAX f32 reference mirroring PyTorch F.conv1d semantics."""
    out = lax.conv_general_dilated(
        x_nct, wd_torch, window_strides=(1,), padding=[(dilation, dilation)],
        rhs_dilation=(dilation,), dimension_numbers=("NCH", "OIH", "NCH"))
    out = out + bd[None, :, None]
    out = jnp.maximum(out, 0.0)
    out = lax.conv_general_dilated(
        out, w1_torch, window_strides=(1,), padding=[(0, 0)],
        dimension_numbers=("NCH", "OIH", "NCH"))
    out = out + b1[None, :, None]
    return (x_nct + out) * mask_nct[:, 0:1, :]


if __name__ == "__main__":
    N, C, T = 2, 64, 128
    dilation = 2

    key = jax.random.PRNGKey(0)
    k0, k1, k2, k3, k4, k5 = jax.random.split(key, 6)

    x = jax.random.normal(k0, (N, C, T), dtype=jnp.float32)
    # mask like MS-TCN: (N, num_classes, T), binary
    mask = (jax.random.uniform(k1, (N, 4, T)) > 0.3).astype(jnp.float32)

    # Parameters in PyTorch Conv1d layout.
    wd = jax.random.normal(k2, (C, C, 3), dtype=jnp.float32) * 0.05   # (C_out, C_in, 3)
    bd = jax.random.normal(k3, (C,), dtype=jnp.float32) * 0.05
    w1 = jax.random.normal(k4, (C, C, 1), dtype=jnp.float32) * 0.05   # (C_out, C_in, 1)
    b1 = jax.random.normal(k5, (C,), dtype=jnp.float32) * 0.05

    y = dilated_residual_layer(x, mask, wd, bd, w1, b1, dilation=dilation)
    y = jax.block_until_ready(y)

    y_ref = _reference(x, mask, wd, bd, w1, b1, dilation=dilation)
    assert y.shape == (N, C, T)
    # bf16 matmul inputs (f32 accumulation) -> slightly looser tolerance than pure f32.
    assert jnp.allclose(y, y_ref, atol=5e-2, rtol=5e-2), "mismatch vs reference"

    print("KERNEL_OK")
</pallas_src>

<mosaic_0001>
module attributes {stable_mosaic.version = 11 : i64} {
  func.func @_dilated_residual_kernel(%arg0: i32, %arg1: memref<1x64x128xf32, #tpu.memory_space<vmem>>, %arg2: memref<64x192xbf16, #tpu.memory_space<vmem>>, %arg3: memref<64x1xf32, #tpu.memory_space<vmem>>, %arg4: memref<64x64xbf16, #tpu.memory_space<vmem>>, %arg5: memref<64x1xf32, #tpu.memory_space<vmem>>, %arg6: memref<1x1x128xf32, #tpu.memory_space<vmem>>, %arg7: memref<1x64x128xf32, #tpu.memory_space<vmem>>) attributes {dimension_semantics = [#tpu.dimension_semantics<parallel>], iteration_bounds = array<i64: 2>, scalar_prefetch = 0 : i64, scratch_operands = 0 : i64, tpu.core_type = #tpu.core_type<tc>, window_params = [{transform_indices = @transform_0, window_bounds = array<i64: 1, 64, 128>}, {pipeline_mode = #tpu.pipeline_mode<synchronous>, transform_indices = @transform_1, window_bounds = array<i64: 64, 192>}, {pipeline_mode = #tpu.pipeline_mode<synchronous>, transform_indices = @transform_2, window_bounds = array<i64: 64, 1>}, {pipeline_mode = #tpu.pipeline_mode<synchronous>, transform_indices = @transform_3, window_bounds = array<i64: 64, 64>}, {pipeline_mode = #tpu.pipeline_mode<synchronous>, transform_indices = @transform_4, window_bounds = array<i64: 64, 1>}, {transform_indices = @transform_5, window_bounds = array<i64: 1, 1, 128>}, {transform_indices = @transform_6, window_bounds = array<i64: 1, 64, 128>}]} {
    %c0 = arith.constant 0 : index
    %c0_0 = arith.constant 0 : index
    %c0_1 = arith.constant 0 : index
    %0 = vector.load %arg1[%c0, %c0_0, %c0_1] : memref<1x64x128xf32, #tpu.memory_space<vmem>>, vector<1x64x128xf32>
    %1 = vector.shape_cast %0 : vector<1x64x128xf32> to vector<64x128xf32>
    %2 = tpu.iota {dimensions = array<i32: 1>} : vector<64x128xi32>
    %c2_i32 = arith.constant 2 : i32
    %3 = vector.broadcast %c2_i32 : i32 to vector<64x128xi32>
    %4 = arith.cmpi sge, %2, %3 : vector<64x128xi32>
    %c2_i32_2 = arith.constant 2 : i32
    %5 = tpu.dynamic_rotate %1 by %c2_i32_2 dim 1 : vector<64x128xf32>, i32 -> vector<64x128xf32>
    %cst = arith.constant 0.000000e+00 : f32
    %6 = vector.broadcast %cst : f32 to vector<64x128xf32>
    %7 = arith.select %4, %5, %6 : vector<64x128xi1>, vector<64x128xf32>
    %c126_i32 = arith.constant 126 : i32
    %8 = vector.broadcast %c126_i32 : i32 to vector<64x128xi32>
    %9 = arith.cmpi slt, %2, %8 : vector<64x128xi32>
    %c126_i32_3 = arith.constant 126 : i32
    %10 = tpu.dynamic_rotate %1 by %c126_i32_3 dim 1 : vector<64x128xf32>, i32 -> vector<64x128xf32>
    %cst_4 = arith.constant 0.000000e+00 : f32
    %11 = vector.broadcast %cst_4 : f32 to vector<64x128xf32>
    %12 = arith.select %9, %10, %11 : vector<64x128xi1>, vector<64x128xf32>
    %13 = tpu.concatenate %7, %1, %12 in 0 : vector<64x128xf32>, vector<64x128xf32>, vector<64x128xf32> -> vector<192x128xf32>
    %14 = arith.truncf %13 : vector<192x128xf32> to vector<192x128xbf16>
    %c0_5 = arith.constant 0 : index
    %c0_6 = arith.constant 0 : index
    %15 = vector.load %arg2[%c0_5, %c0_6] : memref<64x192xbf16, #tpu.memory_space<vmem>>, vector<64x192xbf16>
    %cst_7 = arith.constant dense<0.000000e+00> : vector<64x128xf32>
    %16 = tpu.matmul %15, %14, %cst_7 {dimension_numbers = #tpu.dot_dimension_numbers<[1], [0], [0], [1], [0, 0, 1, 1], [], []>} : vector<64x192xbf16>, vector<192x128xbf16>, vector<64x128xf32> -> vector<64x128xf32>
    %c0_8 = arith.constant 0 : index
    %c0_9 = arith.constant 0 : index
    %17 = vector.load %arg3[%c0_8, %c0_9] : memref<64x1xf32, #tpu.memory_space<vmem>>, vector<64x1xf32>
    %18 = vector.broadcast %17 : vector<64x1xf32> to vector<64x128xf32>
    %19 = arith.addf %16, %18 : vector<64x128xf32>
    %cst_10 = arith.constant 0.000000e+00 : f32
    %20 = vector.broadcast %cst_10 : f32 to vector<64x128xf32>
    %21 = arith.maximumf %19, %20 : vector<64x128xf32>
    %c0_11 = arith.constant 0 : index
    %c0_12 = arith.constant 0 : index
    %22 = vector.load %arg4[%c0_11, %c0_12] : memref<64x64xbf16, #tpu.memory_space<vmem>>, vector<64x64xbf16>
    %23 = arith.truncf %21 : vector<64x128xf32> to vector<64x128xbf16>
    %cst_13 = arith.constant dense<0.000000e+00> : vector<64x128xf32>
    %24 = tpu.matmul %22, %23, %cst_13 {dimension_numbers = #tpu.dot_dimension_numbers<[1], [0], [0], [1], [0, 0, 1, 1], [], []>} : vector<64x64xbf16>, vector<64x128xbf16>, vector<64x128xf32> -> vector<64x128xf32>
    %c0_14 = arith.constant 0 : index
    %c0_15 = arith.constant 0 : index
    %25 = vector.load %arg5[%c0_14, %c0_15] : memref<64x1xf32, #tpu.memory_space<vmem>>, vector<64x1xf32>
    %26 = vector.broadcast %25 : vector<64x1xf32> to vector<64x128xf32>
    %27 = arith.addf %24, %26 : vector<64x128xf32>
    %28 = arith.addf %1, %27 : vector<64x128xf32>
    %c0_16 = arith.constant 0 : index
    %c0_17 = arith.constant 0 : index
    %c0_18 = arith.constant 0 : index
    %29 = vector.load %arg6[%c0_16, %c0_17, %c0_18] : memref<1x1x128xf32, #tpu.memory_space<vmem>>, vector<1x1x128xf32>
    %30 = vector.shape_cast %29 : vector<1x1x128xf32> to vector<1x128xf32>
    %31 = vector.broadcast %30 : vector<1x128xf32> to vector<64x128xf32>
    %32 = arith.mulf %28, %31 : vector<64x128xf32>
    %c0_19 = arith.constant 0 : index
    %c0_20 = arith.constant 0 : index
    %c0_21 = arith.constant 0 : index
    %33 = vector.load %arg7[%c0_19, %c0_20, %c0_21] : memref<1x64x128xf32, #tpu.memory_space<vmem>>, vector<1x64x128xf32>
    %34 = vector.shape_cast %33 : vector<1x64x128xf32> to vector<64x128xf32>
    %35 = vector.shape_cast %32 : vector<64x128xf32> to vector<1x64x128xf32>
    tpu.vector_store %arg7[%c0_19, %c0_20, %c0_21], %35 {strides = array<i32>} : memref<1x64x128xf32, #tpu.memory_space<vmem>>, vector<1x64x128xf32>,
    return
  }
  func.func @transform_0(%arg0: i32) -> (i32, i32, i32) {
    %c0_i32 = arith.constant 0 : i32
    %c0_i32_0 = arith.constant 0 : i32
    %c0_i32_1 = arith.constant 0 : i32
    return %arg0, %c0_i32, %c0_i32_0 : i32, i32, i32
  }
  func.func @transform_1(%arg0: i32) -> (i32, i32) {
    %c0_i32 = arith.constant 0 : i32
    %c0_i32_0 = arith.constant 0 : i32
    %c0_i32_1 = arith.constant 0 : i32
    return %c0_i32, %c0_i32_0 : i32, i32
  }
  func.func @transform_2(%arg0: i32) -> (i32, i32) {
    %c0_i32 = arith.constant 0 : i32
    %c0_i32_0 = arith.constant 0 : i32
    %c0_i32_1 = arith.constant 0 : i32
    return %c0_i32, %c0_i32_0 : i32, i32
  }
  func.func @transform_3(%arg0: i32) -> (i32, i32) {
    %c0_i32 = arith.constant 0 : i32
    %c0_i32_0 = arith.constant 0 : i32
    %c0_i32_1 = arith.constant 0 : i32
    return %c0_i32, %c0_i32_0 : i32, i32
  }
  func.func @transform_4(%arg0: i32) -> (i32, i32) {
    %c0_i32 = arith.constant 0 : i32
    %c0_i32_0 = arith.constant 0 : i32
    %c0_i32_1 = arith.constant 0 : i32
    return %c0_i32, %c0_i32_0 : i32, i32
  }
  func.func @transform_5(%arg0: i32) -> (i32, i32, i32) {
    %c0_i32 = arith.constant 0 : i32
    %c0_i32_0 = arith.constant 0 : i32
    %c0_i32_1 = arith.constant 0 : i32
    return %arg0, %c0_i32, %c0_i32_0 : i32, i32, i32
  }
  func.func @transform_6(%arg0: i32) -> (i32, i32, i32) {
    %c0_i32 = arith.constant 0 : i32
    %c0_i32_0 = arith.constant 0 : i32
    %c0_i32_1 = arith.constant 0 : i32
    return %arg0, %c0_i32, %c0_i32_0 : i32, i32, i32
  }
}

</mosaic_0001>

<bundles_post_ra>
// kernel: tpu_custom_call.1
= control target key start
LH: loop header
LB: loop body
LE: loop exit
PB: predicated region body
PF: predicated region fallthrough
CT: control target
= control target key end

     0   :  { %11 = vsyncpa [#allocation3], 0  ;;  %s1560_s0 = inlined_call_operand.vmem [shape: f32[2,64,128], index: 0, kind: input, shape index: {}]   ;;  %s1561_s1 = inlined_call_operand.hbm [shape: bf16[64,192], index: 1, kind: input, shape index: {}]   ;;  %s1562_s2 = inlined_call_operand.vmem [shape: f32[64,1], index: 2, kind: input, shape index: {}]   ;;  %s1563_s3 = inlined_call_operand.hbm [shape: bf16[64,64], index: 3, kind: input, shape index: {}]   ;;  %s1564_s4 = inlined_call_operand.vmem [shape: f32[64,1], index: 4, kind: input, shape index: {}]   ;;  %s1565_s5 = inlined_call_operand.vmem [shape: f32[2,1,128], index: 5, kind: input, shape index: {}]   ;;  %s1566_s6 = inlined_call_operand.hbm [shape: f32[2,64,128], index: 6, kind: output, shape index: {}]  }
   0x1   :  { %12 = vsyncpa [#allocation6], 0 }
   0x2   :  { %13 = vsyncpa [#allocation4], 0 }
   0x3   :  { %15 = vsyncpa [#allocation4 + $0x1], 0  ;;  %s1229_s21 = smov 0   ;;  %s1231_s22 = smov 0  }
   0x4   :  { %s1233_s23 = smov 0   ;;  %s1235_s24 = smov 0  }
   0x5 LB: > { %s1250_s25 = sadd.s32 4294967295, %s1180_s24   ;;  %s840_s26 = sadd.s32 4294967294, %s1180_s24   ;;  %s1180_s24 = sphi %s1235_s24, %s1588_s24   ;;  %s1176_s23 = sphi %s1233_s23, %s1587_s23   ;;  %s1172_s22 = sphi %s1231_s22, %s1586_s22   ;;  %s1168_s21 = sphi %s1229_s21, %s1585_s21  }
   0x6   : > { %s1254_s27 = sadd.s32 1, %s1180_s24   ;;  %s164_s28 = sadd.s32 1, %s1176_s23 }
   0x7   : > { %s161_s29 = ssub.s32 %s1180_s24, %s1254_s27  ;;  %p174_p0 = scmp.ne.s32.totalorder %s1176_s23, %s1172_s22 }
   0x8   : > { %p162_p1 = scmp.eq.s32.totalorder %s161_s29, 0  ;;  %p175_p2 = scmp.eq.s32.totalorder %s1250_s25, 1 }
   0x9   : > { %p180_p3 = scmp.ne.s32.totalorder %s1172_s22, %s1168_s21  ;;  %p181_p4 = scmp.eq.s32.totalorder %s840_s26, 1 }
   0xa   : > { %s1265_s30 = scalar_select %p162_p1, %s1176_s23, %s164_s28  }
   0xb   : > { %p1267_p5 = por %p175_p2, %p174_p0  ;;  %p1271_p6 = por %p181_p4, %p180_p3 }
   0xc   : > { %p841_p7 = scmp.ge.s32.totalorder %s1180_s24, 1  ;;  %p188_p8 = scmp.lt.s32.totalorder %s1180_s24, 3 }
   0xd   : > { %s1570_s7 = scalar_select %p1267_p5, 1, 0 }
   0xe   : > { %s1571_s8 = scalar_select %p1271_p6, 1, 0 }
   0xf   : > { %p1567_p9 = scmp.eq.s32.totalorder %s1250_s25, 0  ;;  %p1278_p10 = pnand %p841_p7, %p188_p8 }
  0x10   : > { %s1182_s10 = smov [#allocation2]   ;;  %s1183_s13 = smov [#allocation5]  }
  0x11   : > { %s1572_s9 = scalar_select %p1278_p10, 1, 0 }
  0x12   : > { %s200_s11 = sshll.u32 %s1182_s10, 4  ;;  %p937_p11 = pneg %p1278_p10  ;;  %s201_s11 = int_to_ptr.vmem [resolvable:$true] %s200_s11 }
  0x13   : > { %s216_s14 = sshll.u32 %s1183_s13, 4  ;;  %s1054_s17 = scalar_lea.hbm %s1561_s1, 1024  ;;  %s1290_s14 = int_to_ptr.vmem [resolvable:$true] %s216_s14 }
  0x14   : > { %p1286_p12 = pnand %p1567_p9, %p937_p11  ;;  %p1055_p13 = scmp.ne.s32.totalorder %s1561_s1, %s1054_s17 }
  0x15   : > { %p1061_p3 = scmp.lt.u32.totalorder %s1054_s17, %s1561_s1 }
  0x16   : > { %p1056_p0 = pneg %p1286_p12 }
  0x18   : > { %p1057_p1 = pnand %p1056_p0, %p1055_p13 }
  0x1a   : > { %p1058_p2 = pneg %p1057_p1 }
  0x1c   : > { %p1063_p4 = pnand %p1061_p3, %p1058_p2 }
  0x1e   : > { %1066 = shalt.err (!%p1063_p4)
}
  0x1f   : > { %s1067_s28 = scalar_lea.vmem %s201_s11, 1024  ;;  %p1075_p9 = scmp.lt.s32.totalorder %s201_s11, %s201_s11 }
  0x20   : > { %p1068_p7 = scmp.ne.s32.totalorder %s201_s11, %s1067_s28  ;;  %p1076_p6 = scmp.lt.s32.totalorder %s1067_s28, %s1067_s28 }
  0x22   : > { %p1070_p8 = pnand %p1068_p7, %p1056_p0  ;;  %p1077_p5 = por %p1076_p6, %p1075_p9 }
  0x24   : > { %p1071_p11 = pneg %p1070_p8 }
  0x26   : > { %p1078_p10 = pnand %p1077_p5, %p1071_p11 }
  0x28   : > { %1081 = shalt.err (!%p1078_p10)
}
  0x29   : > { %s1184_s29 = smov 128   ;;  %s1185_s10 = smov 8  }
  0x2a   : > { %940 = dma.hbm_to_vmem [thread:$0]  (!%p1286_p12), %s1561_s1, 1024, %s201_s11, [#allocation3], %s1184_s29, %s1184_s29, %s1185_s10  }
  0x2b   : > { %s1082_s18 = scalar_lea.hbm %s1563_s3, 512 }
  0x2c   : > { %p1083_p13 = scmp.ne.s32.totalorder %s1563_s3, %s1082_s18  ;;  %p1089_p9 = scmp.lt.u32.totalorder %s1082_s18, %s1563_s3 }
  0x2e   : > { %p1085_p5 = pnand %p1083_p13, %p1056_p0 }
  0x30   : > { %p1086_p6 = pneg %p1085_p5 }
  0x32   : > { %p1091_p10 = pnand %p1089_p9, %p1086_p6 }
  0x34   : > { %1094 = shalt.err (!%p1091_p10)
}
  0x35   : > { %s1095_s11 = scalar_lea.vmem %s1290_s14, 512  ;;  %p1103_p4 = scmp.lt.s32.totalorder %s1290_s14, %s1290_s14 }
  0x36   : > { %p1096_p1 = scmp.ne.s32.totalorder %s1290_s14, %s1095_s11  ;;  %p1104_p7 = scmp.lt.s32.totalorder %s1095_s11, %s1095_s11 }
  0x38   : > { %p1098_p2 = pnand %p1096_p1, %p1056_p0  ;;  %p1105_p8 = por %p1104_p7, %p1103_p4 }
  0x3a   : > { %p1099_p3 = pneg %p1098_p2 }
  0x3c   : > { %p1106_p11 = pnand %p1105_p8, %p1099_p3 }
  0x3e   : > { %1109 = shalt.err (!%p1106_p11)
}
  0x3f   : > { %s1186_s29 = smov 64   ;;  %s1187_s10 = smov 4  }
  0x40   : > { %943 = dma.hbm_to_vmem [thread:$0]  (!%p1286_p12), %s1563_s3, 512, %s1290_s14, [#allocation6], %s1186_s29, %s1186_s29, %s1187_s10  }
  0x41   : > { %p1574_p13 = scmp.ne.s32.totalorder %s1572_s9, 0 }
  0x42   : > { %p1575_p0 = scmp.eq.s32.totalorder (!%p1574_p13), %s1250_s25, 0 }
  0x43   : > { %249 = sbr.rel (%p1574_p13) target bundleno = 745 (0x2e9), region = 44 }
  0x4a   : > { %1155 = dma.done.wait (%p1575_p0), [#allocation3], 1024   ;;  %p1576_p5 = pmov %p1575_p0 }
  0x4b   : > { %p1577_p6 = pmov %p1575_p0 }
  0x4c   : > { %1157 = vsyncadd (%p1576_p5), [#allocation3], 4294966272 }
  0x4d   : > { %1159 = dma.done.wait (%p1577_p6), [#allocation6], 512   ;;  %p1578_p9 = pmov %p1575_p0 }
  0x4e   : > { %p286_p10 = scmp.lt.s32.totalorder %s1250_s25, 1  ;;  %v1188_v0 = vmov 0   ;;  %s1189_s18 = smov 2   ;;  %v1040_v13 = vld [vmem:[#allocation2 + $0x4] ss:$8 sps:$4 sm:$0xff]   ;;  %vm459_vm0 = vcmask 523264   ;;  %v303_v30 = vlaneseq }
  0x4f   : > { %1161 = vsyncadd (%p1578_p9), [#allocation6], 4294966784  ;;  %472 = vmatprep.subr.bf16.mxu0 %v1188_v0  ;;  %1037 = vset.pattern.permute.xlu1 %v1188_v0  ;;  %s1190_s19 = smov 126   ;;  %v376_v14 = vld [vmem:[%s1562_s2 + $0x8] sm:$0xff]  ;;  %v375_v15 = vld [vmem:[%s1562_s2] sm:$0xff]  ;;  %s283_s29 = sand.u32 1, %s1172_s22  }
  0x50   : > { %s1353_s9 = scalar_select %p286_p10, %s1250_s25, 1  ;;  %1036 = vset.pattern.permute.xlu0 %v1188_v0  ;;  %883 = vmatprep.mubr.msk.bf16.mxu0 %vm459_vm0, %v1040_v13  ;;  %v377_v16 = vld [vmem:[%s1562_s2 + $0x10] sm:$0xff]  ;;  %v378_v17 = vld [vmem:[%s1562_s2 + $0x18] sm:$0xff]  ;;  %v379_v18 = vld [vmem:[%s1562_s2 + $0x20] sm:$0xff]  ;;  %v304_v31 = vand.u32 127, %v303_v30 }
  0x51   : > { %v380_v19 = vld [vmem:[%s1562_s2 + $0x28] sm:$0xff]  ;;  %v381_v20 = vld [vmem:[%s1562_s2 + $0x30] sm:$0xff]  ;;  %v382_v21 = vld [vmem:[%s1562_s2 + $0x38] sm:$0xff]  ;;  %s902_s14 = sshll.u32 %s1250_s25, 10  ;;  %s1519_s25 = scalar_lea.sflag [#allocation4], %s283_s29 }
  0x52   : > { %s901_s12 = sshll.u32 %s1353_s9, 6  ;;  %v557_v22 = vld [vmem:[%s1564_s4] sm:$0xff]  ;;  %v558_v23 = vld [vmem:[%s1564_s4 + $0x8] sm:$0xff]  ;;  %v559_v24 = vld [vmem:[%s1564_s4 + $0x10] sm:$0xff]  ;;  %vm305_vm1 = vcmp.ge.s32.totalorder %v304_v31, 2  ;;  %vm330_vm3 = vcmp.lt.s32.totalorder %v304_v31, 126  ;;  %s293_s15 = scalar_lea.vmem %s1565_s5, %s1353_s9 }
  0x53   : > { %s290_s17 = scalar_lea.vmem %s1560_s0, %s901_s12  ;;  %v560_v25 = vld [vmem:[%s1564_s4 + $0x18] sm:$0xff]  ;;  %v561_v26 = vld [vmem:[%s1564_s4 + $0x20] sm:$0xff]  ;;  %v562_v27 = vld [vmem:[%s1564_s4 + $0x28] sm:$0xff]  ;;  %s848_s12 = sshll.u32 %s283_s29, 6 }
  0x54   : > { %v1360_v1 = vld [vmem:[%s290_s17] sm:$0xff]  ;;  %v1362_v2 = vld [vmem:[%s290_s17 + $0x8] sm:$0xff]  ;;  %v1364_v3 = vld [vmem:[%s290_s17 + $0x10] sm:$0xff]  ;;  %s1494_s9 = scalar_lea.vmem [#allocation7], %s848_s12  ;;  %p1583_p1 = scmp.ne.s32.totalorder %s1570_s7, 0 }
  0x55   : > { %v996_v4 = vpack.i.bf16 %v1362_v2, %v1360_v1  ;;  %v1368_v5 = vld [vmem:[%s290_s17 + $0x18] sm:$0xff]  ;;  %v1370_v6 = vld [vmem:[%s290_s17 + $0x20] sm:$0xff]  ;;  %v1372_v7 = vld [vmem:[%s290_s17 + $0x28] sm:$0xff]  ;;  %v359_v49 = vpack.c.bf16 %v1362_v2, %v1360_v1  ;;  %s747_s16 = sshll.u32 %s1494_s9, 4  ;;  %s1191_s26 = smov [#allocation7]   ;;  %s1512_s16 = int_to_ptr.vmem [resolvable:$true] %s747_s16 }
  0x56   : > { %v1006_v8 = vpack.i.bf16 %v1372_v7, %v1370_v6  ;;  %v1376_v9 = vld [vmem:[%s290_s17 + $0x30] sm:$0xff]  ;;  %v1378_v10 = vld [vmem:[%s290_s17 + $0x38] sm:$0xff]  ;;  %v1001_v11 = vpack.i.bf16 %v1368_v5, %v1364_v3  ;;  %vm1433_vm2 = vmpackc.low %vm305_vm1, %vm305_vm1  ;;  %v360_v50 = vpack.c.bf16 %v1368_v5, %v1364_v3  ;;  %v361_v51 = vpack.c.bf16 %v1372_v7, %v1370_v6  ;;  %s1110_s20 = scalar_lea.vmem %s1512_s16, 1024  ;;  %s1114_s28 = sshll.u32 %s1191_s26, 4  ;;  %s1115_s28 = int_to_ptr.vmem [resolvable:$false] %s1114_s28 }
  0x57   : > { %997 = vrot.lane.b32.xlu0 %v996_v4, %s1189_s18  ;;  %v1011_v12 = vpack.i.bf16 %v1378_v10, %v1376_v9  ;;  %v563_v28 = vld [vmem:[%s1564_s4 + $0x30] sm:$0xff]  ;;  %v564_v29 = vld [vmem:[%s1564_s4 + $0x38] sm:$0xff]  ;;  %v362_v55 = vpack.c.bf16 %v1378_v10, %v1376_v9  ;;  %vm1461_vm4 = vmpackc.low %vm330_vm3, %vm330_vm3  ;;  %p1111_p12 = scmp.ne.s32.totalorder %s1512_s16, %s1110_s20  ;;  %s1116_s11 = scalar_lea.vmem %s1115_s28, 2048 }
  0x58   : > { %1007 = vrot.lane.b32.xlu1 %v1006_v8, %s1189_s18  ;;  %p1117_p4 = scmp.lt.s32.totalorder %s1512_s16, %s1115_s28  ;;  %p1118_p7 = scmp.lt.s32.totalorder %s1116_s11, %s1110_s20 }
  0x59   : > { %p1112_p2 = pnand %p1111_p12, %p1583_p1 }
  0x5a   : > { %p1119_p8 = por %p1118_p7, %p1117_p4 }
  0x5b   : > { %1002 = vrot.lane.b32.xlu0 %v1001_v11, %s1189_s18  ;;  %p1113_p3 = pneg %p1112_p2 }
  0x5c   : > { %1012 = vrot.lane.b32.xlu1 %v1011_v12, %s1189_s18 }
  0x5d   : > { %p1120_p11 = pnand %p1119_p8, %p1113_p3 }
  0x5f   : > { %1017 = vrot.lane.b32.xlu0 %v996_v4, %s1190_s19 }
  0x60   : > { %1022 = vrot.lane.b32.xlu1 %v1001_v11, %s1190_s19 }
  0x63   : > { %1027 = vrot.lane.b32.xlu0 %v1006_v8, %s1190_s19 }
  0x64   : > { %1032 = vrot.lane.b32.xlu1 %v1011_v12, %s1190_s19  ;;  %s1510_s19 = scalar_lea.hbm %s1566_s6, %s902_s14 }
  0x67   : > { %385 = vperm.xlu0 %1036, %v375_v15   ;;  %v1038_v15 = vld [vmem:[#allocation2] ss:$8 sps:$4 sm:$0xff]  }
  0x68   : > { %390 = vperm.xlu1 %1037, %v376_v14  }
  0x6b   : > { %400 = vperm.xlu0 %1036, %v378_v17   ;;  %v1043_v17 = vld [vmem:[#allocation2 + $0x10] ss:$8 sps:$4 sm:$0xff]  }
  0x6c   : > { %395 = vperm.xlu1 %1037, %v377_v16   ;;  %v1041_v16 = vld [vmem:[#allocation2 + $0x14] ss:$8 sps:$4 sm:$0xff]  }
  0x6f   : > { %410 = vperm.xlu0 %1036, %v380_v19   ;;  %v1046_v19 = vld [vmem:[#allocation2 + $0x20] ss:$8 sps:$4 sm:$0xff]  }
  0x70   : > { %405 = vperm.xlu1 %1037, %v379_v18   ;;  %v1044_v18 = vld [vmem:[#allocation2 + $0x24] ss:$8 sps:$4 sm:$0xff]  }
  0x73   : > { %420 = vperm.xlu0 %1036, %v382_v21   ;;  %v1049_v21 = vld [vmem:[#allocation2 + $0x30] ss:$8 sps:$4 sm:$0xff]  }
  0x74   : > { %415 = vperm.xlu1 %1037, %v381_v20   ;;  %v1047_v20 = vld [vmem:[#allocation2 + $0x34] ss:$8 sps:$4 sm:$0xff]  }
  0x77   : > { %572 = vperm.xlu0 %1036, %v558_v23  }
  0x78   : > { %567 = vperm.xlu1 %1037, %v557_v22  }
  0x7b   : > { %582 = vperm.xlu0 %1036, %v560_v25  }
  0x7c   : > { %577 = vperm.xlu1 %1037, %v559_v24  }
  0x7f   : > { %592 = vperm.xlu0 %1036, %v562_v27  }
  0x80   : > { %587 = vperm.xlu1 %1037, %v561_v26  }
  0x83   : > { %602 = vperm.xlu0 %1036, %v564_v29  }
  0x84   : > { %597 = vperm.xlu1 %1037, %v563_v28  }
  0xc9   : > { %v998_v32 = vpop.permute.xlu0 %997 }
  0xca   : > { %v1000_v33 = vunpack.i.h.bf16 %v998_v32  ;;  %v999_v34 = vunpack.i.l.bf16 %v998_v32  ;;  %v1008_v35 = vpop.permute.xlu1 %1007 }
  0xcb   : > { %v1010_v41 = vunpack.i.h.bf16 %v1008_v35  ;;  %v1009_v42 = vunpack.i.l.bf16 %v1008_v35 }
  0xcc   : > { %v860_v37 = vpack.c.bf16 %v1000_v33, %v999_v34 }
  0xcd   : > { %v1003_v38 = vpop.permute.xlu0 %1002  ;;  %v866_v45 = vpack.c.bf16 %v1010_v41, %v1009_v42 }
  0xce   : > { %v1005_v39 = vunpack.i.h.bf16 %v1003_v38  ;;  %v1004_v40 = vunpack.i.l.bf16 %v1003_v38  ;;  %861 = vmatpush1.bf16.msk.msra.mxu0 %vm1433_vm2, %v860_v37  ;;  %v1013_v43 = vpop.permute.xlu1 %1012 }
  0xcf   : > { %474 = vmatprep.subr.bf16.mxu0 %v1188_v0  ;;  %v1015_v46 = vunpack.i.h.bf16 %v1013_v43  ;;  %v1014_v47 = vunpack.i.l.bf16 %v1013_v43 }
  0xd0   : > { %v863_v44 = vpack.c.bf16 %v1005_v39, %v1004_v40 }
  0xd1   : > { %v869_v48 = vpack.c.bf16 %v1015_v46, %v1014_v47  ;;  %v1018_v52 = vpop.permute.xlu0 %1017 }
  0xd2   : > { %864 = vmatpush1.bf16.msk.msra.mxu0 %vm1433_vm2, %v863_v44  ;;  %v1020_v53 = vunpack.i.h.bf16 %v1018_v52  ;;  %v1019_v54 = vunpack.i.l.bf16 %v1018_v52  ;;  %v1023_v56 = vpop.permute.xlu1 %1022 }
  0xd3   : > { %476 = vmatprep.subr.bf16.mxu0 %v1188_v0  ;;  %v1025_v58 = vunpack.i.h.bf16 %v1023_v56  ;;  %v1024_v59 = vunpack.i.l.bf16 %v1023_v56 }
  0xd4   : > { %v872_v57 = vpack.c.bf16 %v1020_v53, %v1019_v54 }
  0xd5   : > { %v1028_v61 = vpop.permute.xlu0 %1027  ;;  %v875_v62 = vpack.c.bf16 %v1025_v58, %v1024_v59 }
  0xd6   : > { %867 = vmatpush1.bf16.msk.msra.mxu0 %vm1433_vm2, %v866_v45  ;;  %v1030_v63 = vunpack.i.h.bf16 %v1028_v61  ;;  %v1029_v4 = vunpack.i.l.bf16 %v1028_v61  ;;  %v1033_v8 = vpop.permute.xlu1 %1032 }
  0xd7   : > { %478 = vmatprep.subr.bf16.mxu0 %v1188_v0  ;;  %v1035_v12 = vunpack.i.h.bf16 %v1033_v8  ;;  %v1034_v13 = vunpack.i.l.bf16 %v1033_v8 }
  0xd8   : > { %v878_v11 = vpack.c.bf16 %v1030_v63, %v1029_v4 }
  0xd9   : > { %v881_v14 = vpack.c.bf16 %v1035_v12, %v1034_v13  ;;  %v1052_v12 = vld [vmem:[#allocation5 + $0x10] sm:$0xff]   ;;  %v1053_v13 = vld [vmem:[#allocation5 + $0x18] sm:$0xff]  }
  0xda   : > { %870 = vmatpush1.bf16.msk.msra.mxu0 %vm1433_vm2, %v869_v48 }
  0xdb   : > { %480 = vmatprep.subr.bf16.mxu0 %v1188_v0 }
  0xde   : > { %481 = vmatpush1.bf16.msra.mxu0 %v359_v49 }
  0xdf   : > { %482 = vmatprep.subr.bf16.mxu0 %v1188_v0 }
  0xe2   : > { %483 = vmatpush1.bf16.msra.mxu0 %v360_v50 }
  0xe3   : > { %484 = vmatprep.subr.bf16.mxu0 %v1188_v0 }
  0xe6   : > { %485 = vmatpush1.bf16.msra.mxu0 %v361_v51  ;;  %v386_v22 = vpop.permute.xlu0 %385 }
  0xe7   : > { %486 = vmatprep.subr.bf16.mxu0 %v1188_v0  ;;  %v391_v26 = vpop.permute.xlu1 %390 }
  0xea   : > { %487 = vmatpush1.bf16.msra.mxu0 %v362_v55  ;;  %v401_v37 = vpop.permute.xlu0 %400 }
  0xeb   : > { %488 = vmatprep.subr.bf16.mxu0 %v1188_v0  ;;  %v396_v33 = vpop.permute.xlu1 %395 }
  0xee   : > { %873 = vmatpush1.bf16.msk.msra.mxu0 %vm1461_vm4, %v872_v57  ;;  %v411_v48 = vpop.permute.xlu0 %410 }
  0xef   : > { %490 = vmatprep.subr.bf16.mxu0 %v1188_v0  ;;  %v406_v44 = vpop.permute.xlu1 %405 }
  0xf2   : > { %876 = vmatpush1.bf16.msk.msra.mxu0 %vm1461_vm4, %v875_v62  ;;  %v421_v59 = vpop.permute.xlu0 %420 }
  0xf3   : > { %492 = vmatprep.subr.bf16.mxu0 %v1188_v0  ;;  %v416_v55 = vpop.permute.xlu1 %415 }
  0xf6   : > { %879 = vmatpush1.bf16.msk.msra.mxu0 %vm1461_vm4, %v878_v11  ;;  %v1051_v11 = vld [vmem:[#allocation5 + $0x8] sm:$0xff]  }
  0xf7   : > { %494 = vmatprep.subr.bf16.mxu0 %v1188_v0  ;;  %v1050_v0 = vld [vmem:[#allocation5] sm:$0xff]  }
  0xf8   : > { %919 = vmatprep.mubr.msk.bf16.mxu1 %vm459_vm0, %v1050_v0  ;;  %v895_v0 = vld [vmem:[%s293_s15] ss:$0 sm:$0xff] }
  0xfa   : > { %882 = vmatpush1.bf16.msk.msra.mxu0 %vm1461_vm4, %v881_v14  ;;  %v568_v14 = vpop.permute.xlu1 %567 }
  0xfd   : > { %505 = vmatmul.mubr.bf16.vlgmr.msra.gmra.mrb[0].mxu0 %v1038_v15  ;;  %v573_v15 = vpop.permute.xlu0 %572 }
  0xfe   : > { %884 = vmatprep.mubr.msk.bf16.mxu0 %vm459_vm0, %v1041_v16  ;;  %v578_v16 = vpop.permute.xlu1 %577 }
 0x105   : > { %513 = vmatmul.mubr.bf16.gmra.mrb[4].mxu0 %v1043_v17  ;;  %v583_v17 = vpop.permute.xlu0 %582 }
 0x106   : > { %885 = vmatprep.mubr.msk.bf16.mxu0 %vm459_vm0, %v1044_v18 }
 0x10d   : > { %521 = vmatmul.mubr.bf16.gmra.mrb[8].mxu0 %v1046_v19 }
 0x10e   : > { %886 = vmatprep.mubr.msk.bf16.mxu0 %vm459_vm0, %v1047_v20 }
 0x115   : > { %529 = vmatmul.mubr.bf16.gmra.mrb[12].mxu0 %v1049_v21  ;;  %v588_v21 = vpop.permute.xlu1 %587 }
 0x1d0   : > { %v506_v23 = vpop.f32.mrb[0].mxu0 }
 0x1d1   : > { %v507_v24 = vadd.f32 %v506_v23, %v386_v22  ;;  %v508_v25 = vpop.f32.mrb[1].mxu0 }
 0x1d2   : > { %v509_v27 = vpop.f32.mrb[2].mxu0 }
 0x1d3   : > { %v510_v28 = vadd.f32 %v509_v27, %v391_v26  ;;  %v511_v29 = vpop.f32.mrb[3].mxu0  ;;  %v537_v30 = vmax.f32 %v507_v24, 0.0  ;;  %v593_v27 = vpop.permute.xlu0 %592 }
 0x1d5   : > { %v538_v31 = vmax.f32 %v510_v28, 0.0 }
 0x1d7   : > { %v553_v32 = vpack.c.bf16 %v538_v31, %v537_v30 }
 0x1d8   : > { %v514_v34 = vpop.f32.mrb[4].mxu0 }
 0x1d9   : > { %v515_v35 = vadd.f32 %v514_v34, %v396_v33  ;;  %v516_v36 = vpop.f32.mrb[5].mxu0  ;;  %911 = vmatprep.subr.bf16.mxu1 %v553_v32  ;;  %v598_v34 = vpop.permute.xlu1 %597 }
 0x1da   : > { %v517_v38 = vpop.f32.mrb[6].mxu0  ;;  %912 = vmatpush3.bf16.msra.mxu1 %v553_v32 }
 0x1db   : > { %v518_v39 = vadd.f32 %v517_v38, %v401_v37  ;;  %v519_v40 = vpop.f32.mrb[7].mxu0  ;;  %v539_v41 = vmax.f32 %v515_v35, 0.0  ;;  %v603_v37 = vpop.permute.xlu0 %602 }
 0x1dd   : > { %v540_v42 = vmax.f32 %v518_v39, 0.0 }
 0x1df   : > { %v554_v43 = vpack.c.bf16 %v540_v42, %v539_v41 }
 0x1e0   : > { %v522_v45 = vpop.f32.mrb[8].mxu0 }
 0x1e1   : > { %v523_v46 = vadd.f32 %v522_v45, %v406_v44  ;;  %v524_v47 = vpop.f32.mrb[9].mxu0  ;;  %913 = vmatprep.subr.bf16.mxu1 %v554_v43 }
 0x1e2   : > { %v525_v49 = vpop.f32.mrb[10].mxu0  ;;  %914 = vmatpush3.bf16.msra.mxu1 %v554_v43 }
 0x1e3   : > { %v526_v50 = vadd.f32 %v525_v49, %v411_v48  ;;  %v527_v51 = vpop.f32.mrb[11].mxu0  ;;  %v541_v52 = vmax.f32 %v523_v46, 0.0 }
 0x1e5   : > { %v542_v53 = vmax.f32 %v526_v50, 0.0 }
 0x1e7   : > { %v555_v54 = vpack.c.bf16 %v542_v53, %v541_v52 }
 0x1e8   : > { %v530_v56 = vpop.f32.mrb[12].mxu0 }
 0x1e9   : > { %v531_v57 = vadd.f32 %v530_v56, %v416_v55  ;;  %v532_v58 = vpop.f32.mrb[13].mxu0  ;;  %915 = vmatprep.subr.bf16.mxu1 %v555_v54 }
 0x1ea   : > { %v533_v60 = vpop.f32.mrb[14].mxu0  ;;  %916 = vmatpush3.bf16.msra.mxu1 %v555_v54 }
 0x1eb   : > { %v534_v61 = vadd.f32 %v533_v60, %v421_v59  ;;  %v535_v62 = vpop.f32.mrb[15].mxu0  ;;  %v543_v63 = vmax.f32 %v531_v57, 0.0 }
 0x1ed   : > { %v544_v4 = vmax.f32 %v534_v61, 0.0 }
 0x1ef   : > { %v556_v8 = vpack.c.bf16 %v544_v4, %v543_v63 }
 0x1f1   : > { %917 = vmatprep.subr.bf16.mxu1 %v556_v8 }
 0x1f2   : > { %918 = vmatpush3.bf16.msra.mxu1 %v556_v8 }
 0x1f5   : > { %920 = vmatmul.mubr.msk.bf16.vlgmr.msra.gmra.mrb[0].mxu1 %vm459_vm0, %v1051_v11 }
 0x1f6   : > { %923 = vmatprep.mubr.msk.bf16.mxu1 %vm459_vm0, %v1052_v12 }
 0x1fd   : > { %924 = vmatmul.mubr.msk.bf16.gmra.mrb[4].mxu1 %vm459_vm0, %v1053_v13 }
 0x2c8   : > { %v921_v18 = vpop.f32.mrb[0].mxu1 }
 0x2c9   : > { %v680_v19 = vadd.f32 %v921_v18, %v578_v16  ;;  %v671_v20 = vpop.f32.mrb[1].mxu1 }
 0x2ca   : > { %v672_v22 = vadd.f32 %v671_v20, %v568_v14  ;;  %v922_v23 = vpop.f32.mrb[2].mxu1 }
 0x2cb   : > { %v704_v24 = vadd.f32 %v680_v19, %v1364_v3  ;;  %v683_v25 = vadd.f32 %v922_v23, %v583_v17  ;;  %v674_v26 = vpop.f32.mrb[3].mxu1 }
 0x2cc   : > { %v702_v28 = vadd.f32 %v672_v22, %v1360_v1  ;;  %v675_v29 = vadd.f32 %v674_v26, %v573_v15 }
 0x2cd   : > { %v719_v30 = vmul.f32 %v895_v0, %v704_v24  ;;  %v705_v31 = vadd.f32 %v683_v25, %v1368_v5 }
 0x2ce   : > { %v717_v32 = vmul.f32 %v895_v0, %v702_v28  ;;  %v703_v33 = vadd.f32 %v675_v29, %v1362_v2 }
 0x2cf   : > { %727 = vst [vmem:[%s1494_s9 + $0x10] sm:$0xff] %v719_v30  ;;  %v720_v3 = vmul.f32 %v895_v0, %v705_v31 }
 0x2d0   : > { %725 = vst [vmem:[%s1494_s9] sm:$0xff] %v717_v32  ;;  %v718_v1 = vmul.f32 %v895_v0, %v703_v33  ;;  %v925_v35 = vpop.f32.mrb[4].mxu1 }
 0x2d1   : > { %728 = vst [vmem:[%s1494_s9 + $0x18] sm:$0xff] %v720_v3  ;;  %v696_v36 = vadd.f32 %v925_v35, %v598_v34  ;;  %v687_v5 = vpop.f32.mrb[5].mxu1 }
 0x2d2   : > { %726 = vst [vmem:[%s1494_s9 + $0x8] sm:$0xff] %v718_v1  ;;  %v688_v2 = vadd.f32 %v687_v5, %v588_v21  ;;  %v926_v38 = vpop.f32.mrb[6].mxu1 }
 0x2d3   : > { %v708_v39 = vadd.f32 %v696_v36, %v1376_v9  ;;  %v699_v40 = vadd.f32 %v926_v38, %v603_v37  ;;  %v690_v41 = vpop.f32.mrb[7].mxu1 }
 0x2d4   : > { %v706_v42 = vadd.f32 %v688_v2, %v1370_v6  ;;  %v691_v43 = vadd.f32 %v690_v41, %v593_v27 }
 0x2d5   : > { %v723_v44 = vmul.f32 %v895_v0, %v708_v39  ;;  %v709_v45 = vadd.f32 %v699_v40, %v1378_v10 }
 0x2d6   : > { %v721_v46 = vmul.f32 %v895_v0, %v706_v42  ;;  %v707_v47 = vadd.f32 %v691_v43, %v1372_v7 }
 0x2d7   : > { %731 = vst [vmem:[%s1494_s9 + $0x30] sm:$0xff] %v723_v44  ;;  %v724_v48 = vmul.f32 %v895_v0, %v709_v45 }
 0x2d8   : > { %729 = vst [vmem:[%s1494_s9 + $0x20] sm:$0xff] %v721_v46  ;;  %v722_v6 = vmul.f32 %v895_v0, %v707_v47 }
 0x2d9   : > { %732 = vst [vmem:[%s1494_s9 + $0x38] sm:$0xff] %v724_v48 }
 0x2da   : > { %730 = vst [vmem:[%s1494_s9 + $0x28] sm:$0xff] %v722_v6 }
 0x2db   : > { %1123 = shalt.err (!%p1120_p11)
}
 0x2dc   : > { %s1124_s29 = scalar_lea.hbm %s1510_s19, 1024  ;;  %s1128_s15 = scalar_lea.hbm %s1566_s6, 2048 }
 0x2dd   : > { %p1125_p13 = scmp.ne.s32.totalorder %s1510_s19, %s1124_s29  ;;  %p1129_p6 = scmp.lt.u32.totalorder %s1510_s19, %s1566_s6 }
 0x2de   : > { %p1130_p9 = scmp.lt.u32.totalorder %s1128_s15, %s1124_s29  ;;  %p1132_p12 = scmp.lt.u32.totalorder %s1124_s29, %s1510_s19 }
 0x2df   : > { %p1126_p0 = pnand %p1125_p13, %p1583_p1 }
 0x2e0   : > { %p1131_p10 = por %p1130_p9, %p1129_p6 }
 0x2e1   : > { %p1127_p5 = pneg %p1126_p0 }
 0x2e2   : > { %p1133_p2 = por %p1132_p12, %p1131_p10 }
 0x2e4   : > { %p1134_p3 = pnand %p1133_p2, %p1127_p5 }
 0x2e6   : > { %1137 = shalt.err (!%p1134_p3)
}
 0x2e7   : > { %s1192_s14 = smov 128   ;;  %s1193_s17 = smov 8  }
 0x2e8   : > { %935 = dma.vmem_to_hbm [thread:$0]  (%p1583_p1), %s1512_s16, 1024, %s1510_s19, %s1519_s25, %s1192_s14, %s1192_s14, %s1193_s17  }
 0x2e9 PF: > { %p952_p4 = scmp.ge.s32.totalorder %s1180_s24, 2  ;;  %s762_s18 = sand.u32 1, %s1168_s21  }
 0x2ea   : > { %p1584_p7 = scmp.ne.s32.totalorder %s1571_s8, 0  ;;  %s763_s20 = scalar_lea.sflag [#allocation4], %s762_s18 }
 0x2ec   : > { %p945_p8 = pnand %p952_p4, %p1584_p7 }
 0x2ee   : > { %1163 = dma.done.wait (!%p945_p8), %s763_s20, 1024  }
 0x2ef   : > { %1165 = vsyncadd (!%p945_p8), %s763_s20, 4294966272  ;;  %p18_p11 = scmp.ge.s32.totalorder %s1254_s27, 4   ;;  %s1585_s21 = smov %s1172_s22 }
 0x2f0   : > { %s1586_s22 = smov %s1176_s23  ;;  %s1587_s23 = smov %s1265_s30 }
 0x2f1   : > { %s1588_s24 = smov %s1254_s27  ;;  %20 = sbr.rel (!%p18_p11) target bundleno = 5 (0x5), region = 91 }
 0x2f8   :  { %768 = vsyncpa [#allocation3], 1 }
 0x2f9   :  { %770 = vsyncpa [#allocation3 + $0x1], 1 }
 0x2fa   :  { %771 = vsyncpa [#allocation6], 1 }
 0x2fb   :  { %772 = vsyncpa [#allocation4], 1 }
 0x2fc   :  { %774 = vsyncpa [#allocation4 + $0x1], 1 }

</bundles_post_ra>
